<compile_context>
chip_gen: v7x
topology: tpu7x:2x2x1
jax: 0.10.0
libtpu: 0.0.40
codegen_flags: <defaults>
</compile_context>

<pallas_src>
import math
import functools

import jax
import jax.numpy as jnp
import numpy as np
from jax.experimental import pallas as pl


HIDDEN_SIZE = 32
HEAD_SIZE = 8          # hidden_size // num_attention_heads (32 / 4) in the ViT config
DROPOUT_P = 0.0        # dropout is identity at inference; no effect on forward values


# ----------------------------------------------------------------------------
# Pallas kernel: full attention head for the whole batch in one invocation
# ----------------------------------------------------------------------------
def _attention_head_kernel(x_ref, wqkv_ref, bqkv_ref, *out_refs,
                           head_size, return_probs):
    out_ref = out_refs[0]
    probs_ref = out_refs[1] if return_probs else None

    B, S, H = x_ref.shape
    hs = head_size

    # Fused Q/K/V projection as ONE 2-D MXU matmul on flattened tokens:
    # (B*S, H) @ (H, 3*hs). Collapsing/splitting leading dims is free.
    x2d = x_ref[...].reshape(B * S, H)
    qkv2d = jnp.dot(x2d, wqkv_ref[...], preferred_element_type=jnp.float32)
    qkv = (qkv2d + bqkv_ref[...]).reshape(B, S, 3 * hs)      # (1,3*hs) bias broadcasts

    q = qkv[..., 0 * hs:1 * hs]   # pre-scaled by 1/sqrt(hs) at pack time
    k = qkv[..., 1 * hs:2 * hs]
    v = qkv[..., 2 * hs:3 * hs]

    # scores = (q/sqrt(hs)) @ k^T : contraction on the last axis of BOTH
    # operands, so no explicit transpose of k is materialized.
    scores = jnp.einsum('bqd,bkd->bqk', q, k,
                        preferred_element_type=jnp.float32)   # (B, S, S)

    # Numerically-stable softmax. Exact divide: the probabilities are an
    # externally returned quantity and the divide is tiny here.
    m = jnp.max(scores, axis=-1, keepdims=True)
    e = jnp.exp(scores - m)
    denom = jnp.sum(e, axis=-1, keepdims=True)
    probs = e / denom

    # Dropout(probs) is identity in eval mode / p = 0.
    out = jnp.einsum('bqk,bkd->bqd', probs, v,
                     preferred_element_type=jnp.float32)      # (B, S, hs)

    out_ref[...] = out.astype(out_ref.dtype)
    if probs_ref is not None:
        probs_ref[...] = probs.astype(probs_ref.dtype)


@functools.partial(jax.jit, static_argnames=('return_probs',))
def attention_head_pallas(x, wqkv, bqkv, *, return_probs=True):
    """x: (B, S, H), pre-packed wqkv: (H, 3*hs), bqkv: (1, 3*hs).

    Returns (output (B, S, hs), probs (B, S, S) or None). Single pallas_call,
    no grid: the whole problem (<10 KB) is resident in VMEM.
    """
    B, S, _ = x.shape
    hs = wqkv.shape[1] // 3

    out_shape = (jax.ShapeDtypeStruct((B, S, hs), jnp.float32),)
    if return_probs:
        out_shape = out_shape + (jax.ShapeDtypeStruct((B, S, S), jnp.float32),)

    kernel = functools.partial(_attention_head_kernel,
                               head_size=hs, return_probs=return_probs)
    results = pl.pallas_call(kernel, out_shape=out_shape)(x, wqkv, bqkv)
    if return_probs:
        return results[0], results[1]
    return results[0], None


# ----------------------------------------------------------------------------
# Parameters (deterministic, in-script), one-time packing, pure-JAX reference
# ----------------------------------------------------------------------------
def init_params(key, hidden_size, head_size):
    ks = jax.random.split(key, 6)
    w = lambda k, shp, s: jax.random.normal(k, shp, jnp.float32) * s
    # nn.Linear(hidden, head) stores weight as (head, hidden) and computes
    # x @ W.T + b; we keep the (hidden, head) transpose so the kernel computes
    # x @ W directly -- mathematically identical.
    return {
        'wq': w(ks[0], (hidden_size, head_size), 0.5),
        'wk': w(ks[1], (hidden_size, head_size), 0.5),
        'wv': w(ks[2], (hidden_size, head_size), 0.5),
        'bq': w(ks[3], (1, head_size), 0.1),
        'bk': w(ks[4], (1, head_size), 0.1),
        'bv': w(ks[5], (1, head_size), 0.1),
    }


def pack_params(params):
    """One-time preprocessing: pack Q/K/V into a single weight/bias and fold
    the 1/sqrt(head_size) attention scale into the query projection."""
    hs = params['wq'].shape[1]
    scale = 1.0 / math.sqrt(hs)
    wqkv = jnp.concatenate(
        [params['wq'] * scale, params['wk'], params['wv']], axis=1)   # (H, 3*hs)
    bqkv = jnp.concatenate(
        [params['bq'] * scale, params['bk'], params['bv']], axis=1)   # (1, 3*hs)
    return wqkv, bqkv


def attention_head_reference(x, params):
    """Pure-jnp mirror of AttentionHead.forward (eval mode)."""
    hs = params['wq'].shape[1]
    q = x @ params['wq'] + params['bq'][0]
    k = x @ params['wk'] + params['bk'][0]
    v = x @ params['wv'] + params['bv'][0]
    scores = jnp.einsum('bqd,bkd->bqk', q, k) / math.sqrt(hs)
    probs = jax.nn.softmax(scores, axis=-1)
    out = jnp.einsum('bqk,bkd->bqd', probs, v)
    return out, probs


# ----------------------------------------------------------------------------
if __name__ == "__main__":
    key = jax.random.PRNGKey(0)
    k_x, k_p = jax.random.split(key)

    B, S = 2, 8
    x = jax.random.normal(k_x, (B, S, HIDDEN_SIZE), jnp.float32)
    params = init_params(k_p, HIDDEN_SIZE, HEAD_SIZE)

    # One-time packing (would be done at model init / weight-load time).
    wqkv, bqkv = pack_params(params)
    wqkv = jax.block_until_ready(wqkv)
    bqkv = jax.block_until_ready(bqkv)

    out, probs = attention_head_pallas(x, wqkv, bqkv, return_probs=True)
    out = jax.block_until_ready(out)
    probs = jax.block_until_ready(probs)

    # Exercise the probs-free fast path as well.
    out_only, _ = attention_head_pallas(x, wqkv, bqkv, return_probs=False)
    out_only = jax.block_until_ready(out_only)

    ref_out, ref_probs = attention_head_reference(x, params)

    assert out.shape == (B, S, HEAD_SIZE)
    assert probs.shape == (B, S, S)
    np.testing.assert_allclose(np.asarray(out), np.asarray(ref_out), rtol=1e-2, atol=1e-2)
    np.testing.assert_allclose(np.asarray(probs), np.asarray(ref_probs), rtol=1e-2, atol=1e-2)
    np.testing.assert_allclose(np.asarray(out_only), np.asarray(ref_out), rtol=1e-2, atol=1e-2)

    print("KERNEL_OK")
</pallas_src>

<mosaic_0001>
module attributes {stable_mosaic.version = 11 : i64} {
  func.func @_attention_head_kernel(%arg0: memref<2x8x32xf32, #tpu.memory_space<vmem>>, %arg1: memref<32x24xf32, #tpu.memory_space<vmem>>, %arg2: memref<1x24xf32, #tpu.memory_space<vmem>>, %arg3: memref<2x8x8xf32, #tpu.memory_space<vmem>>, %arg4: memref<2x8x8xf32, #tpu.memory_space<vmem>>) attributes {dimension_semantics = [], scalar_prefetch = 0 : i64, scratch_operands = 0 : i64, tpu.core_type = #tpu.core_type<tc>} {
    %c0 = arith.constant 0 : index
    %c0_0 = arith.constant 0 : index
    %c0_1 = arith.constant 0 : index
    %0 = vector.load %arg0[%c0, %c0_0, %c0_1] : memref<2x8x32xf32, #tpu.memory_space<vmem>>, vector<2x8x32xf32>
    %1 = vector.shape_cast %0 : vector<2x8x32xf32> to vector<16x32xf32>
    %c0_2 = arith.constant 0 : index
    %c0_3 = arith.constant 0 : index
    %2 = vector.load %arg1[%c0_2, %c0_3] : memref<32x24xf32, #tpu.memory_space<vmem>>, vector<32x24xf32>
    %cst = arith.constant dense<0.000000e+00> : vector<16x24xf32>
    %3 = tpu.matmul %1, %2, %cst {dimension_numbers = #tpu.dot_dimension_numbers<[1], [0], [0], [1], [0, 0, 1, 1], [], []>} : vector<16x32xf32>, vector<32x24xf32>, vector<16x24xf32> -> vector<16x24xf32>
    %c0_4 = arith.constant 0 : index
    %c0_5 = arith.constant 0 : index
    %4 = vector.load %arg2[%c0_4, %c0_5] : memref<1x24xf32, #tpu.memory_space<vmem>>, vector<1x24xf32>
    %5 = vector.broadcast %4 : vector<1x24xf32> to vector<16x24xf32>
    %6 = arith.addf %3, %5 : vector<16x24xf32>
    %7 = vector.shape_cast %6 : vector<16x24xf32> to vector<2x8x24xf32>
    %8 = vector.extract_strided_slice %7 {offsets = [0, 0, 0], sizes = [2, 8, 8], strides = [1, 1, 1]} : vector<2x8x24xf32> to vector<2x8x8xf32>
    %9 = vector.extract_strided_slice %7 {offsets = [0, 0, 8], sizes = [2, 8, 8], strides = [1, 1, 1]} : vector<2x8x24xf32> to vector<2x8x8xf32>
    %10 = vector.extract_strided_slice %7 {offsets = [0, 0, 16], sizes = [2, 8, 8], strides = [1, 1, 1]} : vector<2x8x24xf32> to vector<2x8x8xf32>
    "tpu.trace_start"() <{level = 10 : i32, message = "bqd,bkd->bqk"}> : () -> ()
    %cst_6 = arith.constant dense<0.000000e+00> : vector<2x8x8xf32>
    %11 = tpu.matmul %8, %9, %cst_6 {dimension_numbers = #tpu.dot_dimension_numbers<[2], [2], [1], [1], [0, 0, 0, 1, 1, 1], [0], [0]>} : vector<2x8x8xf32>, vector<2x8x8xf32>, vector<2x8x8xf32> -> vector<2x8x8xf32>
    "tpu.trace_stop"() : () -> ()
    %cst_7 = arith.constant dense<0xFF800000> : vector<2x8xf32>
    %12 = vector.multi_reduction <maximumf>, %11, %cst_7 [2] : vector<2x8x8xf32> to vector<2x8xf32>
    %13 = vector.shape_cast %12 : vector<2x8xf32> to vector<2x8x1xf32>
    %14 = vector.broadcast %13 : vector<2x8x1xf32> to vector<2x8x8xf32>
    %15 = arith.subf %11, %14 : vector<2x8x8xf32>
    %16 = math.exp %15 : vector<2x8x8xf32>
    %cst_8 = arith.constant dense<0.000000e+00> : vector<2x8xf32>
    %17 = vector.multi_reduction <add>, %16, %cst_8 [2] : vector<2x8x8xf32> to vector<2x8xf32>
    %18 = vector.shape_cast %17 : vector<2x8xf32> to vector<2x8x1xf32>
    %19 = vector.broadcast %18 : vector<2x8x1xf32> to vector<2x8x8xf32>
    %20 = arith.divf %16, %19 : vector<2x8x8xf32>
    "tpu.trace_start"() <{level = 10 : i32, message = "bqk,bkd->bqd"}> : () -> ()
    %cst_9 = arith.constant dense<0.000000e+00> : vector<2x8x8xf32>
    %21 = tpu.matmul %20, %10, %cst_9 {dimension_numbers = #tpu.dot_dimension_numbers<[2], [1], [1], [2], [0, 0, 0, 1, 1, 2], [0], [0]>} : vector<2x8x8xf32>, vector<2x8x8xf32>, vector<2x8x8xf32> -> vector<2x8x8xf32>
    "tpu.trace_stop"() : () -> ()
    %c0_10 = arith.constant 0 : index
    %c0_11 = arith.constant 0 : index
    %c0_12 = arith.constant 0 : index
    %22 = vector.load %arg3[%c0_10, %c0_11, %c0_12] : memref<2x8x8xf32, #tpu.memory_space<vmem>>, vector<2x8x8xf32>
    tpu.vector_store %arg3[%c0_10, %c0_11, %c0_12], %21 {strides = array<i32>} : memref<2x8x8xf32, #tpu.memory_space<vmem>>, vector<2x8x8xf32>,
    %c0_13 = arith.constant 0 : index
    %c0_14 = arith.constant 0 : index
    %c0_15 = arith.constant 0 : index
    %23 = vector.load %arg4[%c0_13, %c0_14, %c0_15] : memref<2x8x8xf32, #tpu.memory_space<vmem>>, vector<2x8x8xf32>
    tpu.vector_store %arg4[%c0_13, %c0_14, %c0_15], %20 {strides = array<i32>} : memref<2x8x8xf32, #tpu.memory_space<vmem>>, vector<2x8x8xf32>,
    return
  }
}

</mosaic_0001>

<bundles_post_ra>
// kernel: attention_head_pallas.1
= control target key start
LH: loop header
LB: loop body
LE: loop exit
PB: predicated region body
PF: predicated region fallthrough
CT: control target
= control target key end

     0   :  { %10 = vsyncpa [#allocation3], 0  ;;  %vm31_vm0 = vcmask 261120   ;;  %s700_s0 = inlined_call_operand.vmem [shape: f32[2,8,32], index: 0, kind: input, shape index: {}]   ;;  %s701_s1 = inlined_call_operand.vmem [shape: f32[32,24], index: 1, kind: input, shape index: {}]   ;;  %s702_s2 = inlined_call_operand.vmem [shape: f32[1,24], index: 2, kind: input, shape index: {}]   ;;  %s703_s3 = inlined_call_operand.hbm [shape: f32[2,8,8], index: 3, kind: output, shape index: {0}]   ;;  %s704_s4 = inlined_call_operand.hbm [shape: f32[2,8,8], index: 4, kind: output, shape index: {1}]  }
   0x1   :  { %v20_v0 = vld [vmem:[%s701_s1] sm:$0xff]  ;;  %v21_v1 = vld [vmem:[%s701_s1 + $0x8] sm:$0xff]  ;;  %v22_v2 = vld [vmem:[%s701_s1 + $0x10] sm:$0xff] }
   0x2   :  { %v532_v3 = vpack.c.bf16 %v21_v1, %v20_v0  ;;  %v23_v4 = vld [vmem:[%s701_s1 + $0x18] sm:$0xff]  ;;  %v18_v5 = vld [vmem:[%s700_s0] sm:$0xff] }
   0x3   :  { %v536_v6 = vpack.c.bf16 %v23_v4, %v22_v2  ;;  %509 = vmatprep.mubr.msk.f32.mxu0 %vm31_vm0, %v18_v5 }
   0x4   :  { %11 = vsyncpa [#allocation5], 0  ;;  %533 = vmatprep.subr.bf16.mxu0 %v532_v3  ;;  %v19_v7 = vld [vmem:[%s700_s0 + $0x8] sm:$0xff]  ;;  %v604_v8 = vmov 0.0   ;;  %vm605_vm1 = vmmov 0   ;;  %s606_s28 = smov 120  }
   0x5   :  { %535 = vmatpush3.bf16.msra.mxu0 %v532_v3  ;;  %512 = vmatprep.subr.mxu1 %v604_v8  ;;  %v478_v9 = vld [vmem:[%s702_s2] ss:$0 sm:$0xff]  ;;  %vm116_vm2 = vcmask 64512   ;;  %s607_s0 = smov 112   ;;  %s608_s2 = smov [#allocation4]  }
   0x6   :  { %537 = vmatprep.subr.bf16.mxu0 %v536_v6  ;;  %514 = vmatprep.mubr.msk.f32.mxu1 %vm605_vm1, %v604_v8  ;;  %s463_s29 = sshll.u32 %s608_s2, 4  ;;  %s464_s29 = int_to_ptr.vmem [resolvable:$true] %s463_s29 }
   0x7   :  { %s556_s30 = scalar_lea.vmem %s464_s29, 256  ;;  %p561_p1 = scmp.lt.s32.totalorder %s464_s29, %s464_s29 }
   0x8   :  { %p557_p0 = scmp.ne.s32.totalorder %s464_s29, %s556_s30  ;;  %p562_p2 = scmp.lt.s32.totalorder %s556_s30, %s556_s30 }
   0x9   :  { %539 = vmatpush3.bf16.msra.mxu0 %v536_v6 }
   0xa   :  { %522 = vmatprep.subr.mxu0 %v604_v8  ;;  %p563_p3 = por %p562_p2, %p561_p1 }
   0xc   :  { %510 = vmatmul.mubr.msk.f32.vlgmr.msra.gmra.mrb[0].mxu0 %vm31_vm0, %v19_v7  ;;  %p564_p4 = pnand %p563_p3, %p557_p0 }
   0xd   :  { %524 = vmatprep.mubr.msk.f32.mxu0 %vm605_vm1, %v604_v8 }
  0xdf   :  { %v511_v10 = vpop.f32.mrb[0].mxu0 }
  0xe0   :  { %v104_v11 = vpop.f32.mrb[1].mxu0  ;;  %v110_v13 = vadd.f32 %v511_v10, %v478_v9 }
  0xe1   :  { %v105_v12 = vadd.f32 %v478_v9, %v104_v11 }
  0xe3   :  { %114 = vrot.lane.b32.xlu0 %v105_v12, %s606_s28 }
  0xe7   :  { %192 = vrot.lane.b32.xlu0 %v110_v13, %s606_s28 }
 0x155   :  { %v115_v14 = vpop.permute.xlu0 %114 }
 0x156   :  { %513 = vmatpush3.xpose.msk.msra.mxu1 %vm116_vm2, %v115_v14 }
 0x157   :  { %517 = vmatprep.subr.mxu1 %v604_v8 }
 0x159   :  { %515 = vmatmul.mubr.msk.f32.vlgmr.msra.gmra.mrb[0].mxu1 %vm116_vm2, %v105_v12  ;;  %v193_v15 = vpop.permute.xlu0 %192 }
 0x15a   :  { %518 = vmatpush3.xpose.msk.msra.mxu1 %vm116_vm2, %v193_v15  ;;  %519 = vmatprep.mubr.msk.f32.mxu1 %vm605_vm1, %v604_v8 }
 0x15b   :  { %527 = vmatprep.subr.mxu1 %v604_v8 }
 0x15d   :  { %520 = vmatmul.mubr.msk.f32.vlgmr.msra.gmra.mrb[2].mxu1 %vm116_vm2, %v110_v13 }
 0x15e   :  { %529 = vmatprep.mubr.msk.f32.mxu1 %vm605_vm1, %v604_v8 }
 0x22c   :  { %v187_v16 = vpop.f32.mrb[0].mxu1 }
 0x22d   :  { %v516_v17 = vpop.f32.mrb[1].mxu1  ;;  %v268_v18 = vsel %vm116_vm2, %v187_v16, -inf }
 0x22e   :  { %269 = vmax.xlane.f32.xlu1 %v268_v18 }
 0x230   :  { %v264_v19 = vpop.f32.mrb[2].mxu1 }
 0x231   :  { %v521_v20 = vpop.f32.mrb[3].mxu1  ;;  %v271_v21 = vsel %vm116_vm2, %v264_v19, -inf }
 0x232   :  { %272 = vmax.xlane.f32.xlu1 %v271_v21 }
 0x243   :  { %290 = vrot.lane.b32.xlu1 %v105_v12, %s607_s0 }
 0x2bb   :  { %v270_v22 = vpop.xlane.xlu1 %269 }
 0x2bc   :  { %v274_v23 = vsub.f32 %v187_v16, %v270_v22 }
 0x2be   :  { %v276_v24 = vmul.f32 1.442695, %v274_v23 }
 0x2bf   :  { %v273_v25 = vpop.xlane.xlu1 %272 }
 0x2c0   :  { %548 = vpow2.f32 %v276_v24  ;;  %v275_v26 = vsub.f32 %v264_v19, %v273_v25 }
 0x2c2   :  { %v278_v27 = vmul.f32 1.442695, %v275_v26 }
 0x2c3   :  { %v291_v28 = vpop.permute.xlu1 %290 }
 0x2c4   :  { %550 = vpow2.f32 %v278_v27  ;;  %523 = vmatpush3.msra.mxu0 %v291_v28 }
 0x2ca   :  { %v549_v29 = vpop.eup %548 }
 0x2cb   :  { %v280_v30 = vsel %vm116_vm2, %v549_v29, 0.0 }
 0x2cc   :  { %281 = vadd.xlane.f32.xlu0 %v280_v30 }
 0x2ce   :  { %v551_v31 = vpop.eup %550 }
 0x2cf   :  { %v283_v32 = vsel %vm116_vm2, %v551_v31, 0.0 }
 0x2d0   :  { %284 = vadd.xlane.f32.xlu1 %v283_v32 }
 0x2e1   :  { %366 = vrot.lane.b32.xlu1 %v110_v13, %s607_s0 }
 0x359   :  { %v282_v33 = vpop.xlane.xlu0 %281 }
 0x35a   :  { %552 = vrcp.f32 %v282_v33 }
 0x35d   :  { %v285_v34 = vpop.xlane.xlu1 %284 }
 0x35e   :  { %554 = vrcp.f32 %v285_v34 }
 0x361   :  { %v367_v35 = vpop.permute.xlu1 %366 }
 0x362   :  { %528 = vmatpush3.msra.mxu1 %v367_v35 }
 0x364   :  { %v553_v36 = vpop.eup %552 }
 0x365   :  { %v287_v37 = vmul.f32 %v553_v36, %v549_v29 }
 0x367   :  { %444 = vst.msk [vmem:[#allocation4] sm:$0xff] %vm116_vm2, %v287_v37  ;;  %525 = vmatmul.mubr.msk.f32.vlgmr.msra.gmra.mrb[2].mxu0 %vm116_vm2, %v287_v37 }
 0x368   :  { %v555_v38 = vpop.eup %554 }
 0x369   :  { %v289_v39 = vmul.f32 %v555_v38, %v551_v31 }
 0x36b   :  { %445 = vst.msk [vmem:[#allocation4 + $0x8] sm:$0xff] %vm116_vm2, %v289_v39  ;;  %530 = vmatmul.mubr.msk.f32.vlgmr.msra.gmra.mrb[4].mxu1 %vm116_vm2, %v289_v39 }
 0x36c   :  { %567 = shalt.err (!%p564_p4)
}
 0x36d   :  { %s568_s7 = scalar_lea.hbm %s704_s4, 256 }
 0x36e   :  { %p569_p5 = scmp.ne.s32.totalorder %s704_s4, %s568_s7  ;;  %p572_p6 = scmp.lt.u32.totalorder %s568_s7, %s704_s4 }
 0x370   :  { %p574_p7 = pnand %p572_p6, %p569_p5 }
 0x372   :  { %577 = shalt.err (!%p574_p7)
}
 0x373   :  { %s609_s12 = smov 128   ;;  %s610_s13 = smov 8  }
 0x374   :  { %469 = dma.vmem_to_hbm [thread:$0]  %s464_s29, 256, %s704_s4, [#allocation5], %s609_s12, %s609_s12, %s610_s13  }
 0x375   :  { %s611_s16 = smov [#allocation2]  }
 0x376   :  { %s451_s17 = sshll.u32 %s611_s16, 4  ;;  %s452_s17 = int_to_ptr.vmem [resolvable:$true] %s451_s17 }
 0x377   :  { %s578_s18 = scalar_lea.vmem %s452_s17, 256  ;;  %p583_p9 = scmp.lt.s32.totalorder %s452_s17, %s452_s17 }
 0x378   :  { %p579_p8 = scmp.ne.s32.totalorder %s452_s17, %s578_s18  ;;  %p584_p10 = scmp.lt.s32.totalorder %s578_s18, %s578_s18 }
 0x37a   :  { %p585_p11 = por %p584_p10, %p583_p9 }
 0x37c   :  { %p586_p12 = pnand %p585_p11, %p579_p8 }
 0x43a   :  { %v362_v40 = vpop.f32.mrb[2].mxu0 }
 0x43b   :  { %442 = vst.msk [vmem:[#allocation2] sm:$0xff] %vm116_vm2, %v362_v40  ;;  %v526_v41 = vpop.f32.mrb[3].mxu0 }
 0x43e   :  { %v438_v42 = vpop.f32.mrb[4].mxu1 }
 0x43f   :  { %443 = vst.msk [vmem:[#allocation2 + $0x8] sm:$0xff] %vm116_vm2, %v438_v42  ;;  %v531_v43 = vpop.f32.mrb[5].mxu1 }
 0x440   :  { %589 = shalt.err (!%p586_p12)
}
 0x441   :  { %s590_s20 = scalar_lea.hbm %s703_s3, 256 }
 0x442   :  { %p591_p13 = scmp.ne.s32.totalorder %s703_s3, %s590_s20  ;;  %p594_p0 = scmp.lt.u32.totalorder %s590_s20, %s703_s3 }
 0x444   :  { %p596_p1 = pnand %p594_p0, %p591_p13 }
 0x446   :  { %599 = shalt.err (!%p596_p1)
}
 0x447   :  { %457 = dma.vmem_to_hbm [thread:$0]  %s452_s17, 256, %s703_s3, [#allocation3], %s609_s12, %s609_s12, %s610_s13  }
 0x448   :  { %600 = dma.done.wait [#allocation3], 256  }
 0x449   :  { %601 = vsyncadd [#allocation3], 4294967040 }
 0x44a   :  { %602 = dma.done.wait [#allocation5], 256  }
 0x44b   :  { %603 = vsyncadd [#allocation5], 4294967040 }
 0x44c   :  { %476 = vsyncpa [#allocation3], 1 }
 0x44d   :  { %477 = vsyncpa [#allocation5], 1 }

</bundles_post_ra>
